<compile_context>
chip_gen: v6e
topology: v6e:2x2x1
jax: 0.10.0
libtpu: 0.0.40
codegen_flags: <defaults>
</compile_context>

<pallas_src>
import math

import jax
import jax.numpy as jnp
from jax import lax
from jax.experimental import pallas as pl
from jax.experimental.pallas import tpu as pltpu


def _round_up(a, b):
    return ((a + b - 1) // b) * b


def _cdiv(a, b):
    return (a + b - 1) // b


def _gelu_exact(x):
    # PyTorch F.gelu default ('none'): 0.5 * x * (1 + erf(x / sqrt(2)))
    return 0.5 * x * (1.0 + lax.erf(x * (1.0 / math.sqrt(2.0))))


def ffn_kernel(x_ref, w1v_ref, w1g_ref, b1_ref, w2_ref, b2_ref, o_ref, acc_ref):
    k = pl.program_id(1)

    @pl.when(k == 0)
    def _():
        acc_ref[...] = jnp.zeros_like(acc_ref)

    x = x_ref[...]  # MXU feed dtype (native, or bf16 if cast in the wrapper)

    # First linear, one inner-dim slice of the value and gate halves:
    # (tm, dim) @ (dim, ti) -> (tm, ti), f32 accumulation on the MXU.
    val = jnp.dot(x, w1v_ref[...], preferred_element_type=jnp.float32)
    gate = jnp.dot(x, w1g_ref[...], preferred_element_type=jnp.float32)
    b1 = b1_ref[...].astype(jnp.float32)          # (2, ti): row0=value, row1=gate
    val = val + b1[0:1, :]
    gate = gate + b1[1:2, :]

    # GEGLU (exact erf GELU, matching torch F.gelu default), f32 elementwise.
    y = val * _gelu_exact(gate)
    # Dropout with p=0.0 is the identity -> nothing to do.

    # Second linear: accumulate (tm, ti) @ (ti, dim) into the f32 scratch.
    acc_ref[...] += jnp.dot(y.astype(w2_ref.dtype), w2_ref[...],
                            preferred_element_type=jnp.float32)

    @pl.when(k == pl.num_programs(1) - 1)
    def _():
        o_ref[...] = (acc_ref[...]
                      + b2_ref[...].astype(jnp.float32)).astype(o_ref.dtype)


def _vmem_budget_bytes():
    """Per-core VMEM budget: ~0.85 * physical (headroom for compiler scratch),
    capped at 112 MiB.  Falls back to a v7x-safe 64 MiB physical assumption."""
    cap = 64 * 1024 * 1024
    try:
        cap = int(pltpu.get_tpu_info().vmem_capacity_bytes)
    except Exception:
        pass
    return min(int(cap * 0.85), 112 * 1024 * 1024)


def _choose_tiles(n, dim, inner, x_itemsize, w_itemsize, tm_req, ti_req, budget):
    # Dtype-minimal sublane tile for the row (second-minor) axis.
    sub = {1: 32, 2: 16, 4: 8}.get(x_itemsize, 8)

    # Reduction (inner-dim) tile: multiple of 128, or the whole (small) inner.
    if inner <= 128:
        ti = inner
    else:
        ti = max(128, (min(ti_req, inner) // 128) * 128)

    # Row tile: as large as possible (amortizes weight re-streaming); lane/MXU
    # aligned when >= 128; capped so the v7x megacore gets >= 2 row tiles.
    tm = max(sub, min(tm_req, _round_up(n, sub)))
    if tm >= 128:
        tm = (tm // 128) * 128
    if n > sub and _cdiv(n, tm) < 2:
        tm = _round_up(_cdiv(n, 2), sub)

    def vmem_bytes(tm_, ti_, nbuf):
        b = 2 * tm_ * dim * x_itemsize               # x block (double buffered)
        b += 2 * tm_ * dim * x_itemsize              # out block (double buffered)
        b += tm_ * dim * 4                           # f32 accumulator scratch
        b += 3 * nbuf * dim * ti_ * w_itemsize       # W1v, W1g, W2 streams
        b += nbuf * 2 * ti_ * w_itemsize             # stacked b1
        b += 2 * dim * w_itemsize                    # b2 (resident)
        return b

    # Shrink to fit: ti first (does not change total weight HBM traffic),
    # then tm, then ti down to 128 as a last resort.
    while vmem_bytes(tm, ti, 2) > budget:
        if ti > 256:
            ti = max(256, ti // 2)
        elif tm > 128 and tm > sub:
            tm = max(128, sub, tm // 2)
        elif ti > 128:
            ti = 128
        else:
            break

    inner_pad = _round_up(inner, ti)
    n_k = inner_pad // ti
    # Third buffer on the dominant weight streams only where VMEM is plentiful
    # (128 MiB-class parts) and there are enough reduction steps to benefit.
    nbuf_w = 3 if (n_k >= 3 and budget >= 80 * 1024 * 1024
                   and vmem_bytes(tm, ti, 3) <= budget) else 2
    return tm, ti, inner_pad, nbuf_w


def feed_forward(x, w1, b1, w2, b2, *, tm=1024, ti=512, mxu_dtype=None,
                 vmem_limit_bytes=None):
    """x: (batch, seq, dim).  w1: (dim, 2*inner), b1: (2*inner,),
    w2: (inner, dim), b2: (dim,).  Weights stored as (in_features, out_features).
    `mxu_dtype=jnp.bfloat16` optionally casts the MXU feeds (f32 accumulation
    is kept); leave None for bit-parity with the f32 PyTorch module."""
    batch, seq, dim = x.shape
    inner = w2.shape[0]
    assert w1.shape[1] == 2 * inner

    n = batch * seq
    x2d = x.reshape(n, dim)
    out_dtype = x.dtype

    if mxu_dtype is not None:
        x2d = x2d.astype(mxu_dtype)
        w1 = w1.astype(mxu_dtype)
        w2 = w2.astype(mxu_dtype)

    budget = vmem_limit_bytes if vmem_limit_bytes is not None else _vmem_budget_bytes()
    tm, ti, inner_pad, nbuf_w = _choose_tiles(
        n, dim, inner, x2d.dtype.itemsize, w2.dtype.itemsize, tm, ti, budget)

    # Pre-split W1/b1 into value / gate halves so a ti-slice of each stays
    # column-aligned with the matching W2 row slice (GEGLU stays exact under
    # tiling).  Zero padding keeps padded GEGLU columns exactly zero, so the
    # padded W2 rows contribute nothing to the accumulator.
    w1v, w1g = w1[:, :inner], w1[:, inner:]
    b1v, b1g = b1[:inner], b1[inner:]
    if inner_pad != inner:
        pad = inner_pad - inner
        w1v = jnp.pad(w1v, ((0, 0), (0, pad)))
        w1g = jnp.pad(w1g, ((0, 0), (0, pad)))
        b1v = jnp.pad(b1v, (0, pad))
        b1g = jnp.pad(b1g, (0, pad))
        w2 = jnp.pad(w2, ((0, pad), (0, 0)))
    b1s = jnp.stack([b1v, b1g], axis=0)           # (2, inner_pad): one DMA/step
    b2_2d = b2.reshape(1, dim)

    grid = (_cdiv(n, tm), inner_pad // ti)

    def wspec(shape, index_map):
        # Deeper pipelining for the dominant weight streams where VMEM allows.
        if nbuf_w > 2:
            return pl.BlockSpec(shape, index_map, pipeline_mode=pl.Buffered(nbuf_w))
        return pl.BlockSpec(shape, index_map)

    wb = w2.dtype.itemsize
    cost = pl.CostEstimate(
        flops=6 * n * dim * inner,
        transcendentals=n * inner,
        bytes_accessed=(n * dim * (x2d.dtype.itemsize + x.dtype.itemsize)
                        + (3 * dim * inner + 2 * inner + dim) * wb),
    )

    out2d = pl.pallas_call(
        ffn_kernel,
        out_shape=jax.ShapeDtypeStruct((n, dim), out_dtype),
        grid_spec=pltpu.PrefetchScalarGridSpec(
            num_scalar_prefetch=0,
            grid=grid,
            in_specs=[
                pl.BlockSpec((tm, dim), lambda i, k: (i, 0)),    # x row tile
                wspec((dim, ti), lambda i, k: (0, k)),           # W1 value cols
                wspec((dim, ti), lambda i, k: (0, k)),           # W1 gate cols
                pl.BlockSpec((2, ti), lambda i, k: (0, k)),      # b1 (value,gate)
                wspec((ti, dim), lambda i, k: (k, 0)),           # W2 row slice
                pl.BlockSpec((1, dim), lambda i, k: (0, 0)),     # b2 (resident)
            ],
            out_specs=pl.BlockSpec((tm, dim), lambda i, k: (i, 0)),
            scratch_shapes=[pltpu.VMEM((tm, dim), jnp.float32)],
        ),
        compiler_params=pltpu.CompilerParams(
            dimension_semantics=("parallel", "arbitrary"),
            vmem_limit_bytes=int(budget),
        ),
        cost_estimate=cost,
    )(x2d, w1v, w1g, b1s, w2, b2_2d)

    return out2d.reshape(batch, seq, dim)


def init_params(key, dim, mult=4, dtype=jnp.float32):
    """nn.Linear-style init (uniform +/- 1/sqrt(fan_in)); weights stored
    pre-transposed to (in_features, out_features)."""
    inner = int(dim * mult)
    k1, k2, k3, k4 = jax.random.split(key, 4)
    bound1 = 1.0 / math.sqrt(dim)
    bound2 = 1.0 / math.sqrt(inner)
    w1 = jax.random.uniform(k1, (dim, 2 * inner), dtype, -bound1, bound1)
    b1 = jax.random.uniform(k2, (2 * inner,), dtype, -bound1, bound1)
    w2 = jax.random.uniform(k3, (inner, dim), dtype, -bound2, bound2)
    b2 = jax.random.uniform(k4, (dim,), dtype, -bound2, bound2)
    return w1, b1, w2, b2


def feed_forward_ref(x, w1, b1, w2, b2):
    """Pure-JAX reference for correctness checking."""
    h = jnp.einsum("bsd,de->bse", x, w1) + b1
    inner = w2.shape[0]
    val, gate = h[..., :inner], h[..., inner:]
    y = val * (0.5 * gate * (1.0 + lax.erf(gate / math.sqrt(2.0))))
    return jnp.einsum("bse,ed->bsd", y, w2) + b2


if __name__ == "__main__":
    key = jax.random.PRNGKey(0)
    kx, kp = jax.random.split(key)

    batch, seq, dim, mult = 2, 8, 32, 4
    x = jax.random.normal(kx, (batch, seq, dim), jnp.float32)
    w1, b1, w2, b2 = init_params(kp, dim, mult)

    out = feed_forward(x, w1, b1, w2, b2)   # mxu_dtype=None -> exact f32 path
    out = jax.block_until_ready(out)

    ref = feed_forward_ref(x, w1, b1, w2, b2)
    assert out.shape == (batch, seq, dim)
    assert jnp.allclose(out, ref, atol=1e-4, rtol=1e-4), "mismatch vs reference"

    print("KERNEL_OK")
</pallas_src>

<mosaic_0001>
module attributes {stable_mosaic.version = 11 : i64} {
  func.func @ffn_kernel(%arg0: i32, %arg1: i32, %arg2: memref<8x32xf32, #tpu.memory_space<vmem>>, %arg3: memref<32x128xf32, #tpu.memory_space<vmem>>, %arg4: memref<32x128xf32, #tpu.memory_space<vmem>>, %arg5: memref<2x128xf32, #tpu.memory_space<vmem>>, %arg6: memref<128x32xf32, #tpu.memory_space<vmem>>, %arg7: memref<1x32xf32, #tpu.memory_space<vmem>>, %arg8: memref<8x32xf32, #tpu.memory_space<vmem>>, %arg9: memref<8x32xf32, #tpu.memory_space<vmem>>) attributes {dimension_semantics = [#tpu.dimension_semantics<parallel>, #tpu.dimension_semantics<arbitrary>], iteration_bounds = array<i64: 2, 1>, scalar_prefetch = 0 : i64, scratch_operands = 1 : i64, tpu.core_type = #tpu.core_type<tc>, window_params = [{transform_indices = @transform_0, window_bounds = array<i64: 8, 32>}, {transform_indices = @transform_1, window_bounds = array<i64: 32, 128>}, {transform_indices = @transform_2, window_bounds = array<i64: 32, 128>}, {transform_indices = @transform_3, window_bounds = array<i64: 2, 128>}, {transform_indices = @transform_4, window_bounds = array<i64: 128, 32>}, {pipeline_mode = #tpu.pipeline_mode<synchronous>, transform_indices = @transform_5, window_bounds = array<i64: 1, 32>}, {transform_indices = @transform_6, window_bounds = array<i64: 8, 32>}]} {
    %c0_i32 = arith.constant 0 : i32
    %0 = arith.cmpi eq, %arg1, %c0_i32 : i32
    %1 = arith.extui %0 : i1 to i32
    %c0_i32_0 = arith.constant 0 : i32
    %2 = arith.cmpi ne, %1, %c0_i32_0 : i32
    scf.if %2 {
      %cst_21 = arith.constant 0.000000e+00 : f32
      %32 = vector.broadcast %cst_21 : f32 to vector<8x32xf32>
      %c0_22 = arith.constant 0 : index
      %c0_23 = arith.constant 0 : index
      %33 = vector.load %arg9[%c0_22, %c0_23] : memref<8x32xf32, #tpu.memory_space<vmem>>, vector<8x32xf32>
      tpu.vector_store %arg9[%c0_22, %c0_23], %32 {strides = array<i32>} : memref<8x32xf32, #tpu.memory_space<vmem>>, vector<8x32xf32>,
    } else {
    }
    %c0 = arith.constant 0 : index
    %c0_1 = arith.constant 0 : index
    %3 = vector.load %arg2[%c0, %c0_1] : memref<8x32xf32, #tpu.memory_space<vmem>>, vector<8x32xf32>
    %c0_2 = arith.constant 0 : index
    %c0_3 = arith.constant 0 : index
    %4 = vector.load %arg3[%c0_2, %c0_3] : memref<32x128xf32, #tpu.memory_space<vmem>>, vector<32x128xf32>
    %cst = arith.constant dense<0.000000e+00> : vector<8x128xf32>
    %5 = tpu.matmul %3, %4, %cst {dimension_numbers = #tpu.dot_dimension_numbers<[1], [0], [0], [1], [0, 0, 1, 1], [], []>} : vector<8x32xf32>, vector<32x128xf32>, vector<8x128xf32> -> vector<8x128xf32>
    %c0_4 = arith.constant 0 : index
    %c0_5 = arith.constant 0 : index
    %6 = vector.load %arg4[%c0_4, %c0_5] : memref<32x128xf32, #tpu.memory_space<vmem>>, vector<32x128xf32>
    %cst_6 = arith.constant dense<0.000000e+00> : vector<8x128xf32>
    %7 = tpu.matmul %3, %6, %cst_6 {dimension_numbers = #tpu.dot_dimension_numbers<[1], [0], [0], [1], [0, 0, 1, 1], [], []>} : vector<8x32xf32>, vector<32x128xf32>, vector<8x128xf32> -> vector<8x128xf32>
    %c0_7 = arith.constant 0 : index
    %c0_8 = arith.constant 0 : index
    %8 = vector.load %arg5[%c0_7, %c0_8] : memref<2x128xf32, #tpu.memory_space<vmem>>, vector<2x128xf32>
    %9 = vector.extract_strided_slice %8 {offsets = [0, 0], sizes = [1, 128], strides = [1, 1]} : vector<2x128xf32> to vector<1x128xf32>
    %10 = vector.broadcast %9 : vector<1x128xf32> to vector<8x128xf32>
    %11 = arith.addf %5, %10 : vector<8x128xf32>
    %12 = vector.extract_strided_slice %8 {offsets = [1, 0], sizes = [1, 128], strides = [1, 1]} : vector<2x128xf32> to vector<1x128xf32>
    %13 = vector.broadcast %12 : vector<1x128xf32> to vector<8x128xf32>
    %14 = arith.addf %7, %13 : vector<8x128xf32>
    %cst_9 = arith.constant 5.000000e-01 : f32
    %15 = vector.broadcast %cst_9 : f32 to vector<8x128xf32>
    %16 = arith.mulf %15, %14 : vector<8x128xf32>
    %cst_10 = arith.constant 0.707106769 : f32
    %17 = vector.broadcast %cst_10 : f32 to vector<8x128xf32>
    %18 = arith.mulf %14, %17 : vector<8x128xf32>
    %19 = math.erf %18 : vector<8x128xf32>
    %cst_11 = arith.constant 1.000000e+00 : f32
    %20 = vector.broadcast %cst_11 : f32 to vector<8x128xf32>
    %21 = arith.addf %20, %19 : vector<8x128xf32>
    %22 = arith.mulf %16, %21 : vector<8x128xf32>
    %23 = arith.mulf %11, %22 : vector<8x128xf32>
    %c0_12 = arith.constant 0 : index
    %c0_13 = arith.constant 0 : index
    %24 = vector.load %arg9[%c0_12, %c0_13] : memref<8x32xf32, #tpu.memory_space<vmem>>, vector<8x32xf32>
    %c0_14 = arith.constant 0 : index
    %c0_15 = arith.constant 0 : index
    %25 = vector.load %arg6[%c0_14, %c0_15] : memref<128x32xf32, #tpu.memory_space<vmem>>, vector<128x32xf32>
    %cst_16 = arith.constant dense<0.000000e+00> : vector<8x32xf32>
    %26 = tpu.matmul %23, %25, %cst_16 {dimension_numbers = #tpu.dot_dimension_numbers<[1], [0], [0], [1], [0, 0, 1, 1], [], []>} : vector<8x128xf32>, vector<128x32xf32>, vector<8x32xf32> -> vector<8x32xf32>
    %27 = arith.addf %24, %26 : vector<8x32xf32>
    %c0_17 = arith.constant 0 : index
    %c0_18 = arith.constant 0 : index
    %28 = vector.load %arg9[%c0_17, %c0_18] : memref<8x32xf32, #tpu.memory_space<vmem>>, vector<8x32xf32>
    tpu.vector_store %arg9[%c0_17, %c0_18], %27 {strides = array<i32>} : memref<8x32xf32, #tpu.memory_space<vmem>>, vector<8x32xf32>,
    %c0_i32_19 = arith.constant 0 : i32
    %29 = arith.cmpi eq, %arg1, %c0_i32_19 : i32
    %30 = arith.extui %29 : i1 to i32
    %c0_i32_20 = arith.constant 0 : i32
    %31 = arith.cmpi ne, %30, %c0_i32_20 : i32
    scf.if %31 {
      %c0_21 = arith.constant 0 : index
      %c0_22 = arith.constant 0 : index
      %32 = vector.load %arg9[%c0_21, %c0_22] : memref<8x32xf32, #tpu.memory_space<vmem>>, vector<8x32xf32>
      %c0_23 = arith.constant 0 : index
      %c0_24 = arith.constant 0 : index
      %33 = vector.load %arg7[%c0_23, %c0_24] : memref<1x32xf32, #tpu.memory_space<vmem>>, vector<1x32xf32>
      %34 = vector.broadcast %33 : vector<1x32xf32> to vector<8x32xf32>
      %35 = arith.addf %32, %34 : vector<8x32xf32>
      %c0_25 = arith.constant 0 : index
      %c0_26 = arith.constant 0 : index
      %36 = vector.load %arg8[%c0_25, %c0_26] : memref<8x32xf32, #tpu.memory_space<vmem>>, vector<8x32xf32>
      tpu.vector_store %arg8[%c0_25, %c0_26], %35 {strides = array<i32>} : memref<8x32xf32, #tpu.memory_space<vmem>>, vector<8x32xf32>,
    } else {
    }
    return
  }
  func.func @transform_0(%arg0: i32, %arg1: i32) -> (i32, i32) {
    %c0_i32 = arith.constant 0 : i32
    %c0_i32_0 = arith.constant 0 : i32
    return %arg0, %c0_i32 : i32, i32
  }
  func.func @transform_1(%arg0: i32, %arg1: i32) -> (i32, i32) {
    %c0_i32 = arith.constant 0 : i32
    %c0_i32_0 = arith.constant 0 : i32
    return %c0_i32, %arg1 : i32, i32
  }
  func.func @transform_2(%arg0: i32, %arg1: i32) -> (i32, i32) {
    %c0_i32 = arith.constant 0 : i32
    %c0_i32_0 = arith.constant 0 : i32
    return %c0_i32, %arg1 : i32, i32
  }
  func.func @transform_3(%arg0: i32, %arg1: i32) -> (i32, i32) {
    %c0_i32 = arith.constant 0 : i32
    %c0_i32_0 = arith.constant 0 : i32
    return %c0_i32, %arg1 : i32, i32
  }
  func.func @transform_4(%arg0: i32, %arg1: i32) -> (i32, i32) {
    %c0_i32 = arith.constant 0 : i32
    %c0_i32_0 = arith.constant 0 : i32
    return %arg1, %c0_i32 : i32, i32
  }
  func.func @transform_5(%arg0: i32, %arg1: i32) -> (i32, i32) {
    %c0_i32 = arith.constant 0 : i32
    %c0_i32_0 = arith.constant 0 : i32
    %c0_i32_1 = arith.constant 0 : i32
    return %c0_i32, %c0_i32_0 : i32, i32
  }
  func.func @transform_6(%arg0: i32, %arg1: i32) -> (i32, i32) {
    %c0_i32 = arith.constant 0 : i32
    %c0_i32_0 = arith.constant 0 : i32
    return %arg0, %c0_i32 : i32, i32
  }
}

</mosaic_0001>

<bundles_post_ra>
// kernel: tpu_custom_call.1
= control target key start
LH: loop header
LB: loop body
LE: loop exit
PB: predicated region body
PF: predicated region fallthrough
CT: control target
= control target key end

     0   :  { %11 = vsyncpa [#allocation4], 0  ;;  %s1239_s0 = inlined_call_operand.vmem [shape: f32[16,32], index: 0, kind: input, shape index: {}]   ;;  %s1240_s1 = inlined_call_operand.vmem [shape: f32[32,128], index: 1, kind: input, shape index: {}]   ;;  %s1241_s2 = inlined_call_operand.vmem [shape: f32[32,128], index: 2, kind: input, shape index: {}]   ;;  %s1242_s3 = inlined_call_operand.vmem [shape: f32[2,128], index: 3, kind: input, shape index: {}]   ;;  %s1243_s4 = inlined_call_operand.vmem [shape: f32[128,32], index: 4, kind: input, shape index: {}]   ;;  %s1244_s5 = inlined_call_operand.vmem [shape: f32[1,32], index: 5, kind: input, shape index: {}]   ;;  %s1245_s6 = inlined_call_operand.hbm [shape: f32[16,32], index: 6, kind: output, shape index: {}]  }
   0x1   :  { %13 = vsyncpa [#allocation4 + $0x1], 0  ;;  %s1026_s21 = smov 0   ;;  %s1028_s22 = smov 0  }
   0x2   :  { %s1030_s23 = smov 0   ;;  %s1032_s24 = smov 0  }
   0x3   :  { %s1034_s25 = smov 0   ;;  %s1036_s26 = smov 0  }
   0x4 LB: > { %s749_s27 = sadd.s32 4294967295, %s986_s26   ;;  %s750_s28 = sadd.s32 4294967294, %s986_s26   ;;  %s986_s26 = sphi %s1036_s26, %s19_s26   ;;  %s982_s25 = sphi %s1034_s25, %s1252_s25   ;;  %s978_s24 = sphi %s1032_s24, %s1251_s24   ;;  %s974_s23 = sphi %s1030_s23, %s1250_s23   ;;  %s970_s22 = sphi %s1028_s22, %s1249_s22   ;;  %s966_s21 = sphi %s1026_s21, %s1248_s21  }
   0x5   : > { %s31_s29 = sadd.s32 1, %s982_s25  ;;  %s189_s30 = sadd.s32 1, %s974_s23 }
   0x6   : > { %p33_p0 = scmp.ge.s32.totalorder %s31_s29, 2  ;;  %p199_p1 = scmp.ne.s32.totalorder %s974_s23, %s970_s22 }
   0x7   : > { %p200_p2 = scmp.eq.s32.totalorder %s749_s27, 1  ;;  %p205_p3 = scmp.ne.s32.totalorder %s970_s22, %s966_s21 }
   0x8   : > { %s1254_s29 = smov (%p33_p0, %s31_s29), 0  ;;  %p206_p5 = scmp.eq.s32.totalorder %s750_s28, 1 }
   0x9   : > { %p1066_p4 = por %p200_p2, %p199_p1  ;;  %s186_s8 = ssub.s32 %s982_s25, %s1254_s29 }
   0xa   : > { %p757_p6 = scmp.ge.s32.totalorder %s986_s26, 1  ;;  %p187_p7 = scmp.eq.s32.totalorder %s186_s8, 0 }
   0xb   : > { %p1073_p8 = por %p206_p5, %p205_p3  ;;  %p264_p9 = scmp.lt.s32.totalorder %s986_s26, 3 }
   0xc   : > { %s1079_s10 = scalar_select %p187_p7, %s974_s23, %s189_s30  }
   0xd   : > { %p265_p10 = pnand %p757_p6, %p264_p9 }
   0xe   : > { %p310_p11 = scmp.lt.s32.totalorder (!%p265_p10), %s978_s24, 1  ;;  %s307_s8 = sand.u32 (!%p265_p10), 1, %s970_s22  }
   0xf   : > { %268 = sbr.rel (%p265_p10) target bundleno = 472 (0x1d8), region = 44  ;;  %s758_s11 = sshll.u32 (!%p265_p10), %s307_s8, 3 }
  0x10   : > { %s764_s14 = sshll.u32 (!%p265_p10), %s978_s24, 7  ;;  %s609_s20 = scalar_lea.sflag (!%p265_p10), [#allocation4], %s307_s8 }
  0x11   : > { %s620_s19 = scalar_lea.hbm (!%p265_p10), %s1245_s6, %s764_s14  ;;  %s990_s28 = smov (!%p265_p10), [#allocation3]  }
  0x14   : > { %v342_v0 = vld [vmem:[%s1240_s1 + $0x18] sm:$0xff]  ;;  %v988_v1 = vmov 0.0   ;;  %v341_v2 = vld [vmem:[%s1240_s1 + $0x10] sm:$0xff]  ;;  %vm989_vm0 = vmmov 0   ;;  %vm336_vm1 = vcmask 261120   ;;  %s311_s15 = scalar_select %p310_p11, %s978_s24, 1  ;;  %v348_v26 = vlaneseq }
  0x15   : > { %794 = vmatprep.subr.mxu1 %v988_v1  ;;  %802 = vmatprep.mubr.msk.f32.mxu1 %vm989_vm0, %v988_v1  ;;  %337 = vst.msk [vmem:[#allocation2] sm:$0xff] %vm336_vm1, %v988_v1  ;;  %v340_v3 = vld [vmem:[%s1240_s1 + $0x8] sm:$0xff]  ;;  %v339_v4 = vld [vmem:[%s1240_s1] sm:$0xff]  ;;  %v346_v6 = vld [vmem:[%s1241_s2 + $0x18] sm:$0xff] }
  0x16   : > { %795 = vmatpush3.msra.mxu1 %v342_v0  ;;  %816 = vmatprep.subr.mxu0 %v988_v1  ;;  %s759_s18 = sshll.u32 %s311_s15, 3  ;;  %v345_v7 = vld [vmem:[%s1241_s2 + $0x10] sm:$0xff]  ;;  %v344_v8 = vld [vmem:[%s1241_s2 + $0x8] sm:$0xff]  ;;  %v343_v9 = vld [vmem:[%s1241_s2] sm:$0xff]  ;;  %v349_v27 = vshrl.u32 %v348_v26, 7  ;;  %s309_s15 = scalar_lea.vmem [#allocation3], %s758_s11 }
  0x17   : > { %796 = vmatprep.subr.mxu1 %v988_v1  ;;  %848 = vmatprep.mubr.msk.f32.mxu0 %vm989_vm0, %v988_v1  ;;  %s313_s30 = scalar_lea.vmem %s1239_s0, %s759_s18  ;;  %v522_v10 = vld [vmem:[%s1243_s4 + $0x78] sm:$0xff]  ;;  %v521_v11 = vld [vmem:[%s1243_s4 + $0x70] sm:$0xff]  ;;  %v520_v12 = vld [vmem:[%s1243_s4 + $0x68] sm:$0xff]  ;;  %s622_s16 = sshll.u32 %s309_s15, 4  ;;  %s623_s16 = int_to_ptr.vmem [resolvable:$true] %s622_s16 }
  0x18   : > { %797 = vmatpush3.msra.mxu1 %v341_v2  ;;  %v338_v5 = vld [vmem:[%s313_s30] sm:$0xff]  ;;  %817 = vmatpush3.msra.mxu0 %v522_v10  ;;  %v518_v14 = vld [vmem:[%s1243_s4 + $0x58] sm:$0xff]  ;;  %v517_v15 = vld [vmem:[%s1243_s4 + $0x50] sm:$0xff]  ;;  %v428_v29 = vsub.s32 1, %v349_v27  ;;  %v350_v37 = vsub.s32 0, %v349_v27  ;;  %s910_s27 = scalar_lea.vmem %s623_s16, 128 }
  0x19   : > { %798 = vmatprep.subr.mxu1 %v988_v1  ;;  %818 = vmatprep.subr.mxu0 %v988_v1  ;;  %v519_v13 = vld [vmem:[%s1243_s4 + $0x60] sm:$0xff]  ;;  %v516_v16 = vld [vmem:[%s1243_s4 + $0x48] sm:$0xff]  ;;  %v514_v18 = vld [vmem:[%s1243_s4 + $0x38] sm:$0xff]  ;;  %p911_p12 = scmp.ne.s32.totalorder %s623_s16, %s910_s27  ;;  %s914_s30 = sshll.u32 %s990_s28, 4  ;;  %s915_s30 = int_to_ptr.vmem [resolvable:$false] %s914_s30 }
  0x1a   : > { %799 = vmatpush3.msra.mxu1 %v340_v3  ;;  %819 = vmatpush3.msra.mxu0 %v521_v11  ;;  %v515_v17 = vld [vmem:[%s1243_s4 + $0x40] sm:$0xff]  ;;  %v513_v19 = vld [vmem:[%s1243_s4 + $0x30] sm:$0xff]  ;;  %v512_v20 = vld [vmem:[%s1243_s4 + $0x28] sm:$0xff]  ;;  %s916_s24 = scalar_lea.vmem %s915_s30, 256  ;;  %p917_p1 = scmp.lt.s32.totalorder %s623_s16, %s915_s30 }
  0x1b   : > { %800 = vmatprep.subr.mxu1 %v988_v1  ;;  %820 = vmatprep.subr.mxu0 %v988_v1  ;;  %v511_v21 = vld [vmem:[%s1243_s4 + $0x20] sm:$0xff]  ;;  %v510_v22 = vld [vmem:[%s1243_s4 + $0x18] sm:$0xff]  ;;  %v509_v23 = vld [vmem:[%s1243_s4 + $0x10] sm:$0xff]  ;;  %p912_p13 = pnand %p911_p12, %p1066_p4  ;;  %p918_p2 = scmp.lt.s32.totalorder %s916_s24, %s910_s27 }
  0x1c   : > { %801 = vmatpush3.msra.mxu1 %v339_v4  ;;  %821 = vmatpush3.msra.mxu0 %v520_v12  ;;  %v508_v24 = vld [vmem:[%s1243_s4 + $0x8] sm:$0xff]  ;;  %v507_v25 = vld [vmem:[%s1243_s4] sm:$0xff] }
  0x1d   : > { %803 = vmatmul.mubr.msk.f32.vlgmr.msra.gmra.mxu1 %vm336_vm1, %v338_v5  ;;  %805 = vmatprep.subr.mxu1 %v988_v1  ;;  %v347_v31 = vld [vmem:[%s1242_s3] sm:$0x3]  ;;  %p913_p0 = pneg %p912_p13  ;;  %p919_p3 = por %p918_p2, %p917_p1 }
  0x1e   : > { %806 = vmatpush3.msra.mxu1 %v346_v6  ;;  %813 = vmatprep.mubr.msk.f32.mxu1 %vm989_vm0, %v988_v1  ;;  %v429_v32 = vrot.slane %v347_v31, %v428_v29  ;;  %v351_v38 = vrot.slane %v347_v31, %v350_v37  ;;  %v506_v45 = vld [vmem:[#allocation2] sm:$0xff] }
  0x1f   : > { %807 = vmatprep.subr.mxu1 %v988_v1  ;;  %822 = vmatprep.subr.mxu0 %v988_v1  ;;  %v762_v49 = vld [vmem:[%s1244_s5] ss:$0 sm:$0xff]  ;;  %p920_p5 = pnand %p919_p3, %p913_p0 }
  0x20   : > { %808 = vmatpush3.msra.mxu1 %v345_v7  ;;  %823 = vmatpush3.msra.mxu0 %v519_v13 }
  0x21   : > { %809 = vmatprep.subr.mxu1 %v988_v1  ;;  %824 = vmatprep.subr.mxu0 %v988_v1 }
  0x22   : > { %810 = vmatpush3.msra.mxu1 %v344_v8  ;;  %825 = vmatpush3.msra.mxu0 %v518_v14 }
  0x23   : > { %811 = vmatprep.subr.mxu1 %v988_v1  ;;  %826 = vmatprep.subr.mxu0 %v988_v1 }
  0x24   : > { %812 = vmatpush3.msra.mxu1 %v343_v9  ;;  %827 = vmatpush3.msra.mxu0 %v517_v15 }
  0x25   : > { %814 = vmatmul.mubr.msk.f32.vlgmr.msra.gmra.mxu1 %vm336_vm1, %v338_v5  ;;  %828 = vmatprep.subr.mxu0 %v988_v1 }
  0x26   : > { %829 = vmatpush3.msra.mxu0 %v516_v16 }
  0x27   : > { %830 = vmatprep.subr.mxu0 %v988_v1 }
  0x28   : > { %831 = vmatpush3.msra.mxu0 %v515_v17 }
  0x29   : > { %832 = vmatprep.subr.mxu0 %v988_v1 }
  0x2a   : > { %833 = vmatpush3.msra.mxu0 %v514_v18 }
  0x2b   : > { %834 = vmatprep.subr.mxu0 %v988_v1 }
  0x2c   : > { %835 = vmatpush3.msra.mxu0 %v513_v19 }
  0x2d   : > { %836 = vmatprep.subr.mxu0 %v988_v1 }
  0x2e   : > { %837 = vmatpush3.msra.mxu0 %v512_v20 }
  0x2f   : > { %838 = vmatprep.subr.mxu0 %v988_v1 }
  0x30   : > { %839 = vmatpush3.msra.mxu0 %v511_v21 }
  0x31   : > { %840 = vmatprep.subr.mxu0 %v988_v1 }
  0x32   : > { %841 = vmatpush3.msra.mxu0 %v510_v22 }
  0x33   : > { %842 = vmatprep.subr.mxu0 %v988_v1 }
  0x34   : > { %843 = vmatpush3.msra.mxu0 %v509_v23 }
  0x35   : > { %844 = vmatprep.subr.mxu0 %v988_v1 }
  0x36   : > { %845 = vmatpush3.msra.mxu0 %v508_v24 }
  0x37   : > { %846 = vmatprep.subr.mxu0 %v988_v1 }
  0x38   : > { %847 = vmatpush3.msra.mxu0 %v507_v25 }
  0xdd   : > { %v422_v28 = vpop.f32.mrf.mxu1 }
  0xde   : > { %v423_v42 = vadd.f32 %v422_v28, %v351_v38 }
  0xdf   : > { %v804_v30 = vpop.f32.mrf.mxu1 }
  0xe5   : > { %v496_v33 = vpop.f32.mrf.mxu1 }
  0xe6   : > { %v497_v34 = vadd.f32 %v496_v33, %v429_v32 }
  0xe7   : > { %v815_v35 = vpop.f32.mrf.mxu1 }
  0xe8   : > { %v501_v36 = vmul.f32 0.70710677, %v497_v34  ;;  %v500_v40 = vmul.f32 0.5, %v497_v34 }
  0xea   : > { %908 = verf.f32 %v501_v36 }
  0xf7   : > { %v909_v39 = vpop.eup %908 }
  0xf8   : > { %v503_v41 = vadd.f32 1.0, %v909_v39 }
  0xfa   : > { %v504_v43 = vmul.f32 %v503_v41, %v500_v40 }
  0xfc   : > { %v505_v44 = vmul.f32 %v504_v43, %v423_v42 }
  0xfe   : > { %849 = vmatmul.mubr.f32.vlgmr.msra.gmra.mxu0 %v505_v44 }
 0x1be   : > { %v589_v46 = vpop.f32.mrf.mxu0 }
 0x1bf   : > { %v593_v47 = vadd.f32 %v589_v46, %v506_v45 }
 0x1c0   : > { %v850_v48 = vpop.f32.mrf.mxu0 }
 0x1c1   : > { %594 = vst.msk [vmem:[#allocation2] sm:$0xff] %vm336_vm1, %v593_v47 }
 0x1c8   : > { %v598_v50 = vld [vmem:[#allocation2] sm:$0xff] }
 0x1c9   : > { %v606_v51 = vadd.f32 %v762_v49, %v598_v50 }
 0x1cb   : > { %607 = vst.msk [vmem:[%s309_s15] sm:$0xff] %vm336_vm1, %v606_v51 }
 0x1cc   : > { %923 = shalt.err (!%p920_p5)
}
 0x1cd   : > { %s924_s11 = scalar_lea.hbm %s620_s19, 128  ;;  %s928_s13 = scalar_lea.hbm %s1245_s6, 256 }
 0x1ce   : > { %p925_p6 = scmp.ne.s32.totalorder %s620_s19, %s924_s11  ;;  %p929_p10 = scmp.lt.s32.totalorder %s620_s19, %s1245_s6 }
 0x1cf   : > { %p930_p11 = scmp.lt.s32.totalorder %s928_s13, %s924_s11 }
 0x1d0   : > { %p926_p7 = pnand %p925_p6, %p1066_p4 }
 0x1d1   : > { %p931_p12 = por %p930_p11, %p929_p10 }
 0x1d2   : > { %p927_p9 = pneg %p926_p7 }
 0x1d4   : > { %p932_p13 = pnand %p931_p12, %p927_p9 }
 0x1d6   : > { %935 = shalt.err (!%p932_p13)
}
 0x1d7   : > { %851 = dma.vmem_to_hbm [thread:$0]  (%p1066_p4), %s623_s16, 128, %s620_s19, %s609_s20  }
 0x1d8 PF: > { %p857_p0 = scmp.ge.s32.totalorder %s986_s26, 2  ;;  %s634_s17 = sand.u32 1, %s966_s21  }
 0x1d9   : > { %s635_s18 = scalar_lea.sflag [#allocation4], %s634_s17 }
 0x1da   : > { %p854_p1 = pnand %p857_p0, %p1073_p8 }
 0x1dc   : > { %p855_p2 = pneg %p854_p1 }
 0x1de   : > { %961 = dma.done.wait (%p855_p2), %s635_s18, 128  }
 0x1df   : > { %963 = vsyncadd (%p855_p2), %s635_s18, 4294967168  ;;  %s19_s26 = sadd.s32 1, %s986_s26   ;;  %s1248_s21 = smov %s970_s22 }
 0x1e0   : > { %p16_p3 = scmp.ge.s32.totalorder %s19_s26, 4   ;;  %s1249_s22 = smov %s974_s23 }
 0x1e1   : > { %s1250_s23 = smov %s1079_s10  ;;  %s1251_s24 = smov %s982_s25 }
 0x1e2   : > { %s1252_s25 = smov %s1254_s29  ;;  %18 = sbr.rel (!%p16_p3) target bundleno = 4 (0x4), region = 99 }
 0x1e7   :  { %640 = vsyncpa [#allocation4], 1 }
 0x1e8   :  { %642 = vsyncpa [#allocation4 + $0x1], 1 }

</bundles_post_ra>
